<compile_context>
chip_gen: v5e
topology: v5e:2x2
jax: 0.10.0
libtpu: 0.0.40
codegen_flags: <defaults>
</compile_context>

<pallas_src>
import functools

import jax
import jax.numpy as jnp
from jax.experimental import pallas as pl
from jax.experimental.pallas import tpu as pltpu


# ----------------------------- kernel -----------------------------

def _logic_layer_kernel(a_ref, b_ref, c_ref, o_ref):
    """One grid step computes a (TB, TN) tile of outputs.

    a_ref : (TB, TN)  gathered input `a` per output neuron (stream dtype)
    b_ref : (TB, TN)  gathered input `b` per output neuron (stream dtype)
    c_ref : (4, TN)   affine coefficients [c0, ca, cb, cab] per output neuron (f32)
    o_ref : (TB, TN)  output tile (x.dtype)
    """
    a = a_ref[...].astype(jnp.float32)
    b = b_ref[...].astype(jnp.float32)
    # Load coefficient rows directly from the ref (static slices -> no full-tile copy);
    # (1, TN) rows broadcast over the batch sublanes inside the VPU ops.
    c0 = c_ref[0:1, :]
    ca = c_ref[1:2, :]
    cb = c_ref[2:3, :]
    cab = c_ref[3:4, :]
    # Exact folding of the 16 real-valued binary logic ops:
    #   sum_i w_i * op_i(a, b) == c0 + ca*a + cb*b + cab*(a*b)
    o_ref[...] = (c0 + ca * a + cb * b + cab * (a * b)).astype(o_ref.dtype)


# ----------------------------- tiling helpers -----------------------------

def _round_up(x, m):
    return (x + m - 1) // m * m


def _pick_tiles(B, out_dim, stream_itemsize, tile_b, tile_n, vmem_budget_bytes):
    """Pick (tb, tn) and padded extents so the double-buffered footprint fits VMEM."""
    sub = 16 if stream_itemsize < 4 else 8          # bf16 needs 16-row sublane tiles
    tb = max(sub, min(_round_up(tile_b, sub), _round_up(B, sub)))
    tn = max(128, min(_round_up(tile_n, 128), _round_up(out_dim, 128)))

    def fits(tb_, tn_):
        # a + b streams, f32 output tile, (4, tn) f32 coeff tile; x2 for double buffer.
        per_step = tb_ * tn_ * (2 * stream_itemsize + 4) + 4 * tn_ * 4
        return 2 * per_step <= vmem_budget_bytes

    while tn > 128 and not fits(tb, tn):
        tn = _round_up(tn // 2, 128)
    while tb > sub and not fits(tb, tn):
        tb = max(sub, _round_up(tb // 2, sub))

    bp = _round_up(B, tb)
    np_ = _round_up(out_dim, tn)
    # v7x has 2 TensorCores; don't let the grid collapse to a single block when there
    # is enough work to split along the (parallel) feature axis.
    if bp // tb == 1 and np_ // tn == 1 and tn >= 256:
        tn = _round_up(tn // 2, 128)
        np_ = _round_up(out_dim, tn)
    return tb, tn, bp, np_


# ----------------------------- forward wrapper -----------------------------

@functools.partial(
    jax.jit,
    static_argnames=("tile_n", "tile_b", "stream_dtype", "vmem_budget_bytes"),
)
def logic_layer_forward(x, idx_a, idx_b, coeffs, *, tile_n=2048, tile_b=256,
                        stream_dtype=jnp.bfloat16,
                        vmem_budget_bytes=14 * 1024 * 1024):
    """Pallas forward of LogicLayer.

    x      : (B, in_dim) float32
    idx_a  : (out_dim,) int32       connection indices (self.indices[0])
    idx_b  : (out_dim,) int32       connection indices (self.indices[1])
    coeffs : (4, out_dim) float32   precomputed affine coefficients (see make_coeffs)
    returns (B, out_dim) x.dtype
    """
    B, _ = x.shape
    out_dim = coeffs.shape[1]

    # Column gather in the wrapper (XLA); the kernel consumes lane-dense streams.
    # Streams default to bf16 to halve the kernel-side HBM read traffic (inputs are
    # relaxed booleans in [0,1], so bf16 is ample); math stays f32 in the kernel.
    a = jnp.take(x, idx_a, axis=1).astype(stream_dtype)
    b = jnp.take(x, idx_b, axis=1).astype(stream_dtype)

    itemsize = jnp.dtype(stream_dtype).itemsize
    tb, tn, bp, np_ = _pick_tiles(B, out_dim, itemsize, tile_b, tile_n,
                                  vmem_budget_bytes)

    # Pad to tile multiples (ceil-div grid with zero padding; padded rows/cols are
    # computed but sliced away, coefficients padded with zeros).
    if (bp, np_) != (B, out_dim):
        a = jnp.pad(a, ((0, bp - B), (0, np_ - out_dim)))
        b = jnp.pad(b, ((0, bp - B), (0, np_ - out_dim)))
    coeffs_p = coeffs if np_ == out_dim else jnp.pad(coeffs, ((0, 0), (0, np_ - out_dim)))

    grid = (bp // tb, np_ // tn)

    cost = pl.CostEstimate(
        flops=7 * bp * np_,
        transcendentals=0,
        bytes_accessed=int(bp * np_ * (2 * itemsize + x.dtype.itemsize)
                           + grid[0] * 4 * np_ * 4),
    )

    out = pl.pallas_call(
        _logic_layer_kernel,
        out_shape=jax.ShapeDtypeStruct((bp, np_), x.dtype),
        grid_spec=pltpu.PrefetchScalarGridSpec(
            num_scalar_prefetch=0,
            grid=grid,
            in_specs=[
                pl.BlockSpec((tb, tn), lambda i, j: (i, j)),   # a tile
                pl.BlockSpec((tb, tn), lambda i, j: (i, j)),   # b tile
                pl.BlockSpec((4, tn), lambda i, j: (0, j)),    # coeff tile
            ],
            out_specs=pl.BlockSpec((tb, tn), lambda i, j: (i, j)),
        ),
        compiler_params=pltpu.CompilerParams(
            dimension_semantics=("parallel", "parallel"),
        ),
        cost_estimate=cost,
    )(a, b, coeffs_p)

    return out[:B, :out_dim]


# ----------------------------- parameter / glue setup -----------------------------

def make_logic_layer_params(key, in_dim, out_dim):
    """Deterministic init mirroring LogicLayer.__init__ (connections='random')."""
    k_w, k_c = jax.random.split(key)
    weights = jax.random.normal(k_w, (out_dim, 16), dtype=jnp.float32)
    perm = jax.random.permutation(k_c, 2 * out_dim) % in_dim
    c = perm.reshape(2, out_dim)
    idx_a, idx_b = c[0].astype(jnp.int32), c[1].astype(jnp.int32)
    return weights, idx_a, idx_b


def make_coeffs(weights, training=True):
    """Fold the 16 per-neuron op probabilities into 4 affine coefficients.

    Every one of the 16 real-valued binary logic ops is affine in {1, a, b, a*b}, so
      sum_i w_i * op_i(a, b) = c0 + ca*a + cb*b + cab*(a*b)   (exact rewrite).
    Returns (4, out_dim) float32 with rows [c0, ca, cb, cab].
    """
    if training:
        w = jax.nn.softmax(weights, axis=-1)
    else:
        w = jax.nn.one_hot(jnp.argmax(weights, axis=-1), 16, dtype=jnp.float32)
    w = w.astype(jnp.float32)
    c0 = (w[:, 8] + w[:, 9] + w[:, 10] + w[:, 11]
          + w[:, 12] + w[:, 13] + w[:, 14] + w[:, 15])
    ca = (w[:, 2] + w[:, 3] + w[:, 6] + w[:, 7]
          - w[:, 8] - w[:, 9] - w[:, 12] - w[:, 13])
    cb = (w[:, 4] + w[:, 5] + w[:, 6] + w[:, 7]
          - w[:, 8] - w[:, 9] - w[:, 10] - w[:, 11])
    cab = (w[:, 1] - w[:, 2] - w[:, 4] - 2.0 * w[:, 6] - w[:, 7]
           + w[:, 8] + 2.0 * w[:, 9] + w[:, 11] + w[:, 13] - w[:, 14])
    return jnp.stack([c0, ca, cb, cab], axis=0)


# ----------------------------- pure-JAX reference -----------------------------

def logic_layer_reference(x, weights, idx_a, idx_b, training=True):
    """Direct transcription of LogicLayer.forward_python / bin_op_s (16-term form).

    grad_factor only scales the backward pass, so the forward is unchanged.
    """
    a = x[..., idx_a]
    b = x[..., idx_b]
    ab = a * b
    if training:
        w = jax.nn.softmax(weights, axis=-1)
    else:
        w = jax.nn.one_hot(jnp.argmax(weights, axis=-1), 16, dtype=jnp.float32)
    ops = [
        jnp.zeros_like(a), ab, a - ab, a, b - ab, b,
        a + b - 2 * ab, a + b - ab, 1 - (a + b - ab), 1 - (a + b - 2 * ab),
        1 - b, 1 - b + ab, 1 - a, 1 - a + ab, 1 - ab, jnp.ones_like(a),
    ]
    r = jnp.zeros_like(a)
    for i in range(16):
        r = r + w[:, i] * ops[i]
    return r


if __name__ == "__main__":
    B, IN_DIM, OUT_DIM = 32, 64, 256   # out_dim*2 >= in_dim (LogicLayer invariant)
    key = jax.random.PRNGKey(0)
    k_params, k_x = jax.random.split(key)

    weights, idx_a, idx_b = make_logic_layer_params(k_params, IN_DIM, OUT_DIM)
    # Continuous relaxed-boolean inputs in [0, 1], as in difflogic training.
    x = jax.random.uniform(k_x, (B, IN_DIM), dtype=jnp.float32)

    # --- training mode (softmax over op logits) ---
    coeffs_train = make_coeffs(weights, training=True)
    ref_train = logic_layer_reference(x, weights, idx_a, idx_b, training=True)

    # Exact path: f32 streams (bit-faithful to the reference math, modulo sum order).
    out_f32 = jax.block_until_ready(
        logic_layer_forward(x, idx_a, idx_b, coeffs_train, stream_dtype=jnp.float32))
    assert out_f32.shape == (B, OUT_DIM), out_f32.shape
    err = float(jnp.max(jnp.abs(out_f32 - ref_train)))
    assert jnp.allclose(out_f32, ref_train, atol=1e-5, rtol=1e-5), err

    # Default perf path: bf16 streams, f32 math and f32 output (input-rounding only).
    out_bf16 = jax.block_until_ready(
        logic_layer_forward(x, idx_a, idx_b, coeffs_train))
    err = float(jnp.max(jnp.abs(out_bf16 - ref_train)))
    assert jnp.allclose(out_bf16, ref_train, atol=5e-2), err

    # --- eval mode (hard one-hot op selection) ---
    coeffs_eval = make_coeffs(weights, training=False)
    ref_eval = logic_layer_reference(x, weights, idx_a, idx_b, training=False)
    out_eval = jax.block_until_ready(
        logic_layer_forward(x, idx_a, idx_b, coeffs_eval, stream_dtype=jnp.float32))
    err = float(jnp.max(jnp.abs(out_eval - ref_eval)))
    assert jnp.allclose(out_eval, ref_eval, atol=1e-5, rtol=1e-5), err

    # TODO(synk): forward_cuda_eval / PackBitsTensor (bit-packed uint inference) has no
    # clean float-Pallas equivalent here; eval mode is covered via one-hot coefficients.
    print("KERNEL_OK")
</pallas_src>

<mosaic_0001>
module attributes {stable_mosaic.version = 11 : i64} {
  func.func @_logic_layer_kernel(%arg0: i32, %arg1: i32, %arg2: memref<32x128xf32, #tpu.memory_space<vmem>>, %arg3: memref<32x128xf32, #tpu.memory_space<vmem>>, %arg4: memref<4x128xf32, #tpu.memory_space<vmem>>, %arg5: memref<32x128xf32, #tpu.memory_space<vmem>>) attributes {dimension_semantics = [#tpu.dimension_semantics<parallel>, #tpu.dimension_semantics<parallel>], iteration_bounds = array<i64: 1, 2>, scalar_prefetch = 0 : i64, scratch_operands = 0 : i64, tpu.core_type = #tpu.core_type<tc>, window_params = [{transform_indices = @transform_0, window_bounds = array<i64: 32, 128>}, {transform_indices = @transform_1, window_bounds = array<i64: 32, 128>}, {transform_indices = @transform_2, window_bounds = array<i64: 4, 128>}, {transform_indices = @transform_3, window_bounds = array<i64: 32, 128>}]} {
    %c0 = arith.constant 0 : index
    %c0_0 = arith.constant 0 : index
    %0 = vector.load %arg2[%c0, %c0_0] : memref<32x128xf32, #tpu.memory_space<vmem>>, vector<32x128xf32>
    %c0_1 = arith.constant 0 : index
    %c0_2 = arith.constant 0 : index
    %1 = vector.load %arg3[%c0_1, %c0_2] : memref<32x128xf32, #tpu.memory_space<vmem>>, vector<32x128xf32>
    %c0_3 = arith.constant 0 : index
    %c0_4 = arith.constant 0 : index
    %2 = vector.load %arg4[%c0_3, %c0_4] : memref<4x128xf32, #tpu.memory_space<vmem>>, vector<1x128xf32>
    %c1 = arith.constant 1 : index
    %c0_5 = arith.constant 0 : index
    %3 = vector.load %arg4[%c1, %c0_5] : memref<4x128xf32, #tpu.memory_space<vmem>>, vector<1x128xf32>
    %c2 = arith.constant 2 : index
    %c0_6 = arith.constant 0 : index
    %4 = vector.load %arg4[%c2, %c0_6] : memref<4x128xf32, #tpu.memory_space<vmem>>, vector<1x128xf32>
    %c3 = arith.constant 3 : index
    %c0_7 = arith.constant 0 : index
    %5 = vector.load %arg4[%c3, %c0_7] : memref<4x128xf32, #tpu.memory_space<vmem>>, vector<1x128xf32>
    %6 = vector.broadcast %3 : vector<1x128xf32> to vector<32x128xf32>
    %7 = arith.mulf %6, %0 : vector<32x128xf32>
    %8 = vector.broadcast %2 : vector<1x128xf32> to vector<32x128xf32>
    %9 = arith.addf %8, %7 : vector<32x128xf32>
    %10 = vector.broadcast %4 : vector<1x128xf32> to vector<32x128xf32>
    %11 = arith.mulf %10, %1 : vector<32x128xf32>
    %12 = arith.addf %9, %11 : vector<32x128xf32>
    %13 = arith.mulf %0, %1 : vector<32x128xf32>
    %14 = vector.broadcast %5 : vector<1x128xf32> to vector<32x128xf32>
    %15 = arith.mulf %14, %13 : vector<32x128xf32>
    %16 = arith.addf %12, %15 : vector<32x128xf32>
    %c0_8 = arith.constant 0 : index
    %c0_9 = arith.constant 0 : index
    %17 = vector.load %arg5[%c0_8, %c0_9] : memref<32x128xf32, #tpu.memory_space<vmem>>, vector<32x128xf32>
    tpu.vector_store %arg5[%c0_8, %c0_9], %16 {strides = array<i32>} : memref<32x128xf32, #tpu.memory_space<vmem>>, vector<32x128xf32>,
    return
  }
  func.func @transform_0(%arg0: i32, %arg1: i32) -> (i32, i32) {
    %c0_i32 = arith.constant 0 : i32
    return %arg0, %arg1 : i32, i32
  }
  func.func @transform_1(%arg0: i32, %arg1: i32) -> (i32, i32) {
    %c0_i32 = arith.constant 0 : i32
    return %arg0, %arg1 : i32, i32
  }
  func.func @transform_2(%arg0: i32, %arg1: i32) -> (i32, i32) {
    %c0_i32 = arith.constant 0 : i32
    %c0_i32_0 = arith.constant 0 : i32
    return %c0_i32, %arg1 : i32, i32
  }
  func.func @transform_3(%arg0: i32, %arg1: i32) -> (i32, i32) {
    %c0_i32 = arith.constant 0 : i32
    return %arg0, %arg1 : i32, i32
  }
}

</mosaic_0001>

<bundles_post_ra>
// kernel: logic_layer_forward.1
= control target key start
LH: loop header
LB: loop body
LE: loop exit
PB: predicated region body
PF: predicated region fallthrough
CT: control target
= control target key end

     0   :  { %8 = vsyncpa [#allocation5], 0  ;;  %s816_s0 = inlined_call_operand.vmem [shape: f32[32,256], index: 0, kind: input, shape index: {}]   ;;  %s817_s1 = inlined_call_operand.vmem [shape: f32[32,256], index: 1, kind: input, shape index: {}]   ;;  %s818_s2 = inlined_call_operand.vmem [shape: f32[4,256], index: 2, kind: input, shape index: {}]   ;;  %s819_s3 = inlined_call_operand.hbm [shape: f32[32,256], index: 3, kind: output, shape index: {}]  }
   0x1   :  { %10 = vsyncpa [#allocation5 + $0x1], 0  ;;  %s687_s12 = smov 0   ;;  %s689_s13 = smov 0  }
   0x2   :  { %s691_s14 = smov 0   ;;  %s693_s15 = smov 0  }
   0x3   :  { %s695_s16 = smov 0   ;;  %s697_s17 = smov 0  }
   0x4 LB: > { %s505_s18 = sadd.s32 4294967295, %s662_s17   ;;  %s506_s19 = sadd.s32 4294967294, %s662_s17   ;;  %s662_s17 = sphi %s697_s17, %s16_s17   ;;  %s658_s16 = sphi %s695_s16, %s827_s16   ;;  %s654_s15 = sphi %s693_s15, %s826_s15   ;;  %s650_s14 = sphi %s691_s14, %s825_s14   ;;  %s646_s13 = sphi %s689_s13, %s824_s13   ;;  %s642_s12 = sphi %s687_s12, %s823_s12  }
   0x5   : > { %s25_s20 = sadd.s32 1, %s658_s16  ;;  %s37_s21 = sadd.s32 1, %s650_s14 }
   0x6   : > { %p26_p0 = scmp.ge.s32.totalorder %s25_s20, 2  ;;  %p44_p1 = scmp.ne.s32.totalorder %s650_s14, %s646_s13 }
   0x7   : > { %p45_p2 = scmp.eq.s32.totalorder %s662_s17, 0  ;;  %p130_p3 = scmp.eq.s32.totalorder %s505_s18, 1 }
   0x8   : > { %s829_s20 = smov (%p26_p0, %s25_s20), 0  ;;  %p135_p6 = scmp.ne.s32.totalorder %s646_s13, %s642_s12 }
   0x9   : > { %p726_p4 = por %p45_p2, %p44_p1  ;;  %p730_p5 = por %p130_p3, %p44_p1 }
   0xa   : > { %s33_s24 = ssub.s32 %s658_s16, %s829_s20  ;;  %p136_p8 = scmp.eq.s32.totalorder %s506_s19, 1 }
   0xb   : > { %p35_p7 = scmp.eq.s32.totalorder %s33_s24, 0  ;;  %p508_p10 = scmp.ge.s32.totalorder %s662_s17, 2 }
   0xc   : > { %p741_p9 = por %p136_p8, %p135_p6 }
   0xd   : > { %s739_s25 = scalar_select %p35_p7, %s650_s14, %s37_s21  }
   0xe   : > { %152 = sbr.rel (%p508_p10) target bundleno = 35 (0x23), region = 16 }
  0x13   : > { %155 = sbr.rel (!%p726_p4) target bundleno = 27 (0x1b), region = 20  ;;  %s157_s27 = sand.u32 (%p726_p4), 1, %s650_s14  }
  0x14   : > { %s510_s28 = sshll.u32 (%p726_p4), %s658_s16, 3  ;;  %s509_s29 = sshll.u32 (%p726_p4), %s157_s27, 5 }
  0x15   : > { %s164_s5 = scalar_lea.vmem (%p726_p4), %s816_s0, %s510_s28  ;;  %s159_s6 = scalar_lea.vmem (%p726_p4), [#allocation2], %s509_s29 }
  0x16   : > { %v199_v0 = vld [vmem:[%s164_s5] sm:$0xff] (%p726_p4)  ;;  %v201_v1 = vld [vmem:[%s164_s5 + $0x10] sm:$0xff] (%p726_p4) }
  0x17   : > { %v203_v2 = vld [vmem:[%s164_s5 + $0x20] sm:$0xff] (%p726_p4)  ;;  %200 = vst [vmem:[%s159_s6] sm:$0xff] (%p726_p4), %v199_v0  ;;  %v205_v3 = vld [vmem:[%s164_s5 + $0x30] sm:$0xff] (%p726_p4) }
  0x18   : > { %202 = vst [vmem:[%s159_s6 + $0x8] sm:$0xff] %v201_v1 }
  0x19   : > { %204 = vst [vmem:[%s159_s6 + $0x10] sm:$0xff] %v203_v2 }
  0x1a   : > { %206 = vst [vmem:[%s159_s6 + $0x18] sm:$0xff] %v205_v3 }
  0x1b PF: > { %212 = sbr.rel (!%p726_p4) target bundleno = 35 (0x23), region = 58  ;;  %s214_s7 = sand.u32 (%p726_p4), 1, %s650_s14  }
  0x1c   : > { %s512_s8 = sshll.u32 (%p726_p4), %s658_s16, 3  ;;  %s511_s9 = sshll.u32 (%p726_p4), %s214_s7, 5 }
  0x1d   : > { %s221_s18 = scalar_lea.vmem (%p726_p4), %s817_s1, %s512_s8  ;;  %s216_s19 = scalar_lea.vmem (%p726_p4), [#allocation3], %s511_s9 }
  0x1e   : > { %v256_v4 = vld [vmem:[%s221_s18] sm:$0xff] (%p726_p4)  ;;  %v258_v5 = vld [vmem:[%s221_s18 + $0x10] sm:$0xff] (%p726_p4) }
  0x1f   : > { %v260_v6 = vld [vmem:[%s221_s18 + $0x20] sm:$0xff] (%p726_p4)  ;;  %257 = vst [vmem:[%s216_s19] sm:$0xff] (%p726_p4), %v256_v4  ;;  %v262_v7 = vld [vmem:[%s221_s18 + $0x30] sm:$0xff] (%p726_p4) }
  0x20   : > { %259 = vst [vmem:[%s216_s19 + $0x8] sm:$0xff] %v258_v5 }
  0x21   : > { %261 = vst [vmem:[%s216_s19 + $0x10] sm:$0xff] %v260_v6 }
  0x22   : > { %263 = vst [vmem:[%s216_s19 + $0x18] sm:$0xff] %v262_v7 }
  0x23 PF: > { %p513_p11 = scmp.ge.s32.totalorder %s662_s17, 1  ;;  %p275_p12 = scmp.lt.s32.totalorder %s662_s17, 3 }
  0x25   : > { %p276_p13 = pnand %p513_p11, %p275_p12 }
  0x26   : > { %s282_s21 = sand.u32 (!%p276_p13), 1, %s646_s13   ;;  %p322_p0 = scmp.lt.s32.totalorder (!%p276_p13), %s654_s15, 1 }
  0x27   : > { %279 = sbr.rel (%p276_p13) target bundleno = 65 (0x41), region = 100  ;;  %s768_s22 = sshll.u32 (!%p276_p13), %s282_s21, 5 }
  0x28   : > { %s291_s27 = scalar_lea.vmem (!%p276_p13), [#allocation3], %s768_s22  ;;  %s284_s29 = scalar_lea.vmem (!%p276_p13), [#allocation2], %s768_s22 }
  0x29   : > { %s519_s6 = sshll.u32 (!%p276_p13), %s654_s15, 3  ;;  %s376_s18 = scalar_lea.sflag (!%p276_p13), [#allocation5], %s282_s21 }
  0x2a   : > { %s389_s9 = scalar_lea.hbm (!%p276_p13), %s819_s3, %s519_s6 }
  0x2b   : > { %s392_s11 = sshll.u32 (!%p276_p13), %s389_s9, 4  ;;  %s393_s11 = int_to_ptr.hbm [resolvable:$true] %s392_s11 }
  0x2c   : > { %s323_s24 = scalar_select %p322_p0, %s654_s15, 1  ;;  %v331_v8 = vld [vmem:[%s291_s27] sm:$0xff]  ;;  %v332_v9 = vld [vmem:[%s291_s27 + $0x8] sm:$0xff]  ;;  %v329_v12 = vld [vmem:[%s284_s29 + $0x10] sm:$0xff] }
  0x2d   : > { %v327_v10 = vld [vmem:[%s284_s29] sm:$0xff]  ;;  %v328_v11 = vld [vmem:[%s284_s29 + $0x8] sm:$0xff]  ;;  %v333_v13 = vld [vmem:[%s291_s27 + $0x10] sm:$0xff]  ;;  %s319_s15 = scalar_lea.vmem [#allocation4], %s768_s22  ;;  %s598_s19 = sshra.s32 %s393_s11, 4  ;;  %s599_s19 = int_to_ptr.hbm [resolvable:$true] %s598_s19 }
  0x2e   : > { %s517_s28 = sshll.u32 %s323_s24, 2  ;;  %v330_v14 = vld [vmem:[%s284_s29 + $0x18] sm:$0xff]  ;;  %v358_v16 = vmul.f32 %v331_v8, %v327_v10  ;;  %v359_v17 = vmul.f32 %v332_v9, %v328_v11  ;;  %v360_v22 = vmul.f32 %v333_v13, %v329_v12  ;;  %s390_s10 = sshll.u32 %s319_s15, 4  ;;  %s391_s10 = int_to_ptr.vmem [resolvable:$true] %s390_s10 }
  0x2f   : > { %s325_s5 = scalar_lea.vmem %s818_s2, %s517_s28  ;;  %v334_v15 = vld [vmem:[%s291_s27 + $0x18] sm:$0xff]  ;;  %s600_s22 = scalar_lea.hbm %s599_s19, 32 }
  0x30   : > { %v580_v18 = vld [vmem:[%s325_s5 + $0x1] ss:$0 sm:$0xff]  ;;  %v581_v19 = vld [vmem:[%s325_s5] ss:$0 sm:$0xff]  ;;  %v582_v20 = vld [vmem:[%s325_s5 + $0x2] ss:$0 sm:$0xff]  ;;  %v361_v23 = vmul.f32 %v334_v15, %v330_v14  ;;  %p601_p1 = scmp.ne.s32.totalorder %s599_s19, %s600_s22  ;;  %p605_p4 = scmp.lt.s32.totalorder %s599_s19, %s819_s3 }
  0x31   : > { %v583_v21 = vld [vmem:[%s325_s5 + $0x3] ss:$0 sm:$0xff]  ;;  %v340_v24 = vmul.f32 %v580_v18, %v327_v10  ;;  %v341_v25 = vmul.f32 %v580_v18, %v328_v11  ;;  %v342_v26 = vmul.f32 %v580_v18, %v329_v12  ;;  %v343_v27 = vmul.f32 %v580_v18, %v330_v14  ;;  %s604_s28 = scalar_lea.hbm %s819_s3, 64 }
  0x32   : > { %v350_v28 = vmul.f32 %v582_v20, %v331_v8  ;;  %v363_v29 = vmul.f32 %v583_v21, %v358_v16  ;;  %v351_v30 = vmul.f32 %v582_v20, %v332_v9  ;;  %v364_v31 = vmul.f32 %v583_v21, %v359_v17  ;;  %p602_p2 = pnand %p601_p1, %p730_p5  ;;  %p606_p6 = scmp.lt.s32.totalorder %s604_s28, %s600_s22 }
  0x33   : > { %v345_v32 = vadd.f32 %v581_v19, %v340_v24  ;;  %v346_v33 = vadd.f32 %v581_v19, %v341_v25  ;;  %v347_v34 = vadd.f32 %v581_v19, %v342_v26  ;;  %v352_v35 = vmul.f32 %v582_v20, %v333_v13 }
  0x34   : > { %v365_v36 = vmul.f32 %v583_v21, %v360_v22  ;;  %v348_v37 = vadd.f32 %v581_v19, %v343_v27  ;;  %v353_v38 = vmul.f32 %v582_v20, %v334_v15  ;;  %v366_v39 = vmul.f32 %v583_v21, %v361_v23  ;;  %p603_p3 = pneg %p602_p2  ;;  %p607_p7 = por %p606_p6, %p605_p4 }
  0x35   : > { %v354_v40 = vadd.f32 %v350_v28, %v345_v32  ;;  %v355_v41 = vadd.f32 %v351_v30, %v346_v33  ;;  %v356_v42 = vadd.f32 %v352_v35, %v347_v34 }
  0x36   : > { %v357_v43 = vadd.f32 %v353_v38, %v348_v37  ;;  %p608_p8 = pnand %p607_p7, %p603_p3 }
  0x37   : > { %v367_v44 = vadd.f32 %v363_v29, %v354_v40  ;;  %v368_v45 = vadd.f32 %v364_v31, %v355_v41  ;;  %v369_v46 = vadd.f32 %v365_v36, %v356_v42 }
  0x38   : > { %v370_v47 = vadd.f32 %v366_v39, %v357_v43 }
  0x39   : > { %371 = vst [vmem:[%s319_s15] sm:$0xff] %v367_v44 }
  0x3a   : > { %372 = vst [vmem:[%s319_s15 + $0x8] sm:$0xff] %v368_v45 }
  0x3b   : > { %373 = vst [vmem:[%s319_s15 + $0x10] sm:$0xff] %v369_v46 }
  0x3c   : > { %374 = vst [vmem:[%s319_s15 + $0x18] sm:$0xff] %v370_v47 }
  0x3d   : > { %611 = shalt.err (!%p608_p8)
}
  0x3e   : > { %s664_s21 = smov 128   ;;  %s665_s4 = smov 256  }
  0x3f   : > { %s666_s5 = smov 8  }
  0x40   : > { %522 = dma.vmem_to_hbm [thread:$0]  (%p730_p5), %s391_s10, 512, %s393_s11, %s376_s18, %s664_s21, %s665_s4, %s666_s5  }
  0x41 PF: > { %s407_s6 = sand.u32 1, %s642_s12   ;;  %p525_p11 = pnand %p508_p10, %p741_p9 }
  0x42   : > { %s408_s7 = scalar_lea.sflag [#allocation5], %s407_s6 }
  0x43   : > { %p526_p12 = pneg %p525_p11 }
  0x45   : > { %637 = dma.done.wait (%p526_p12), %s408_s7, 512  }
  0x46   : > { %639 = vsyncadd (%p526_p12), %s408_s7, 4294966784  ;;  %s16_s17 = sadd.s32 1, %s662_s17   ;;  %s823_s12 = smov %s646_s13 }
  0x47   : > { %p13_p13 = scmp.ge.s32.totalorder %s16_s17, 4   ;;  %s824_s13 = smov %s650_s14 }
  0x48   : > { %s825_s14 = smov %s739_s25  ;;  %s826_s15 = smov %s658_s16 }
  0x49   : > { %s827_s16 = smov %s829_s20  ;;  %15 = sbr.rel (!%p13_p13) target bundleno = 4 (0x4), region = 159 }
  0x4e   :  { %414 = vsyncpa [#allocation5], 1 }
  0x4f   :  { %416 = vsyncpa [#allocation5 + $0x1], 1 }

</bundles_post_ra>
